<compile_context>
chip_gen: v6e
topology: v6e:2x2x1
jax: 0.10.0
libtpu: 0.0.40
codegen_flags: <defaults>
</compile_context>

<pallas_src>
import jax
import jax.numpy as jnp
import numpy as np
from jax.experimental import pallas as pl
from jax.experimental.pallas import tpu as pltpu


# ----------------------------------------------------------------------------
# Cache construction (module buffers — plain JAX glue, tiny, built once)
# ----------------------------------------------------------------------------
def build_rope_tables(patch_size, tile_size, max_num_tiles, n_h, h_d,
                      base=10000, append_cls_token=True):
    """Returns:
      cos_pair, sin_pair : [seq_per_tile, h_d//2]                (reference math)
      cos_lane, sin_lane : [max_num_tiles*seq_per_tile, n_h*h_d] (kernel tables)

    The lane tables are interleaved over even/odd pairs, the sin table carries
    the rotation sign (-sin on even lanes, +sin on odd lanes), and both are
    broadcast over heads and tiles so the kernel is a dense mul/add.
    """
    dim = h_d // 2                       # module's `dim` (= embed_dim//n_h//2)
    pgs = tile_size // patch_size
    theta = 1.0 / (base ** (jnp.arange(0, dim, 2)[: dim // 2].astype(jnp.float32) / dim))

    patches_per_tile = pgs * pgs
    patch_idx = jnp.arange(patches_per_tile, dtype=jnp.float32)
    if append_cls_token:
        patch_idx = jnp.concatenate([patch_idx, -jnp.ones((1,), jnp.float32)])
    else:
        patch_idx = jnp.concatenate([-jnp.ones((1,), jnp.float32), patch_idx])

    x_pos = patch_idx % pgs
    y_pos = patch_idx // pgs
    x_theta = (x_pos + 1.0)[:, None] * theta[None, :]
    y_theta = (y_pos + 1.0)[:, None] * theta[None, :]
    freqs = jnp.concatenate([x_theta, y_theta], axis=-1)         # [spt, h_d//2]
    freqs = jnp.where(patch_idx[:, None] < 0, 0.0, freqs)        # zero RoPE at CLS

    cos_pair = jnp.cos(freqs)                                     # [spt, h_d//2]
    sin_pair = jnp.sin(freqs)

    spt = cos_pair.shape[0]
    cos_hd = jnp.repeat(cos_pair, 2, axis=-1)                     # [spt, h_d]
    sin_hd = jnp.stack([-sin_pair, sin_pair], axis=-1).reshape(spt, h_d)
    cos_lane = jnp.tile(cos_hd, (max_num_tiles, n_h))             # [s, n_h*h_d]
    sin_lane = jnp.tile(sin_hd, (max_num_tiles, n_h))
    return cos_pair, sin_pair, cos_lane, sin_lane


# ----------------------------------------------------------------------------
# Pallas kernel: one fused, lane-dense, native-dtype pass
# ----------------------------------------------------------------------------
def _rope_kernel(x_ref, cos_ref, sin_ref, o_ref):
    feat = x_ref.shape[-1]
    x = x_ref[...].astype(jnp.float32)      # (rb, F) in-register upcast
    c = cos_ref[...]                         # (rb, F) f32
    sn = sin_ref[...]                        # (rb, F) f32, sign baked in
    minor = x.ndim - 1

    # Even/odd pair swap via cyclic lane rotations + parity select.  The mask
    # comes from a rolled iota so it works for either rotate-direction
    # convention of pltpu.roll.
    lane = jax.lax.broadcasted_iota(jnp.int32, x.shape, minor)
    partner = jnp.where(lane % 2 == 0, lane + 1, lane - 1)        # lane ^ 1
    rolled_lane = pltpu.roll(lane, shift=1, axis=minor)
    r_a = pltpu.roll(x, shift=1, axis=minor)
    r_b = pltpu.roll(x, shift=feat - 1, axis=minor)
    x_swap = jnp.where(rolled_lane == partner, r_a, r_b)

    o_ref[...] = (x * c + x_swap * sn).astype(o_ref.dtype)


def _pick_seq_block(s, max_rows=512):
    """Rows per block: whole sequence if small; else a multiple-of-8 divisor of
    s capped at max_rows; else max_rows (partial, masked tail block)."""
    if s <= max_rows:
        return s
    cap = max_rows - (max_rows % 8)
    for rb in range(cap, 7, -8):
        if s % rb == 0:
            return rb
    return cap


@jax.jit
def vision_rope_forward(x, cos_lane, sin_lane):
    """x: [b, s, n_h, h_d] (any float dtype).  Returns same shape/dtype with the
    2D axial RoPE applied.  cos_lane/sin_lane: [s, n_h*h_d] f32 (see builder)."""
    b, s, n_h, h_d = x.shape
    feat = n_h * h_d
    if cos_lane.shape != (s, feat) or sin_lane.shape != (s, feat):
        raise ValueError(
            f"Input sequence length {s} / feature width {feat} do not match "
            f"the 2D RoPE lane tables of shape {cos_lane.shape}.")

    x3 = x.reshape(b, s, feat)           # free reshape: lane-dense feature axis

    rb = _pick_seq_block(s)
    grid_s = pl.cdiv(s, rb)

    x_spec = pl.BlockSpec((None, rb, feat), lambda si, bi: (bi, si, 0))
    cs_spec = pl.BlockSpec((rb, feat), lambda si, bi: (si, 0))

    out = pl.pallas_call(
        _rope_kernel,
        grid=(grid_s, b),
        in_specs=[x_spec, cs_spec, cs_spec],
        out_specs=x_spec,
        out_shape=jax.ShapeDtypeStruct((b, s, feat), x.dtype),
        # NOTE: add input_output_aliases={0: 0} when the caller donates x, to
        # reuse its HBM buffer (RoPE is elementwise in place).  Left off here
        # since a non-donated input would force XLA to insert a copy.
        compiler_params=pltpu.CompilerParams(
            dimension_semantics=("parallel", "parallel")),
    )(x3, cos_lane, sin_lane)

    return out.reshape(b, s, n_h, h_d)


# ----------------------------------------------------------------------------
# Pure-JAX reference mirroring the PyTorch forward, for verification
# ----------------------------------------------------------------------------
def vision_rope_reference(x, cos_pair, sin_pair, max_num_tiles):
    b, s, n_h, h_d = x.shape
    spt = s // max_num_tiles
    xf = x.astype(jnp.float32).reshape(b, max_num_tiles, spt, n_h, h_d // 2, 2)
    c = cos_pair.reshape(1, 1, spt, 1, h_d // 2)
    sn = sin_pair.reshape(1, 1, spt, 1, h_d // 2)
    out = jnp.stack(
        [xf[..., 0] * c - xf[..., 1] * sn,
         xf[..., 1] * c + xf[..., 0] * sn], axis=-1)
    return out.reshape(b, s, n_h, h_d).astype(x.dtype)


if __name__ == "__main__":
    # Small config: patch_size=4, tile_size=16 -> 4x4 patch grid,
    # 16 patches + 1 CLS = 17 tokens/tile; 2 tiles -> s = 34.
    # n_h=2, h_d=64 -> lane width n_h*h_d = 128 (dense, unmasked stores).
    patch_size = 4
    tile_size = 16
    max_num_tiles = 2
    n_h = 2
    h_d = 64
    bsz = 2

    pgs = tile_size // patch_size
    spt = pgs * pgs + 1
    s = max_num_tiles * spt

    cos_pair, sin_pair, cos_lane, sin_lane = build_rope_tables(
        patch_size, tile_size, max_num_tiles, n_h, h_d,
        base=10000, append_cls_token=True)

    key = jax.random.PRNGKey(0)
    x = jax.random.normal(key, (bsz, s, n_h, h_d), dtype=jnp.float32)

    # f32 path (matches the PyTorch float() compute exactly).
    out = jax.block_until_ready(vision_rope_forward(x, cos_lane, sin_lane))
    ref = vision_rope_reference(x, cos_pair, sin_pair, max_num_tiles)
    np.testing.assert_allclose(np.asarray(out), np.asarray(ref),
                               rtol=1e-5, atol=1e-5)
    assert out.shape == x.shape and out.dtype == x.dtype

    # bf16 path: HBM traffic stays bf16; compute is f32 inside the kernel.
    x_bf = x.astype(jnp.bfloat16)
    out_bf = jax.block_until_ready(vision_rope_forward(x_bf, cos_lane, sin_lane))
    ref_bf = vision_rope_reference(x_bf, cos_pair, sin_pair, max_num_tiles)
    np.testing.assert_allclose(np.asarray(out_bf.astype(jnp.float32)),
                               np.asarray(ref_bf.astype(jnp.float32)),
                               rtol=2e-2, atol=2e-2)
    assert out_bf.shape == x_bf.shape and out_bf.dtype == x_bf.dtype

    print("KERNEL_OK")
</pallas_src>

<mosaic_0001>
module attributes {stable_mosaic.version = 11 : i64} {
  func.func @_rope_kernel(%arg0: i32, %arg1: i32, %arg2: memref<1x34x128xf32, #tpu.memory_space<vmem>>, %arg3: memref<34x128xf32, #tpu.memory_space<vmem>>, %arg4: memref<34x128xf32, #tpu.memory_space<vmem>>, %arg5: memref<1x34x128xf32, #tpu.memory_space<vmem>>) attributes {dimension_semantics = [#tpu.dimension_semantics<parallel>, #tpu.dimension_semantics<parallel>], iteration_bounds = array<i64: 1, 2>, scalar_prefetch = 0 : i64, scratch_operands = 0 : i64, tpu.core_type = #tpu.core_type<tc>, window_params = [{transform_indices = @transform_0, window_bounds = array<i64: 1, 34, 128>}, {transform_indices = @transform_1, window_bounds = array<i64: 34, 128>}, {transform_indices = @transform_2, window_bounds = array<i64: 34, 128>}, {transform_indices = @transform_3, window_bounds = array<i64: 1, 34, 128>}]} {
    %c0 = arith.constant 0 : index
    %c0_0 = arith.constant 0 : index
    %c0_1 = arith.constant 0 : index
    %0 = vector.load %arg2[%c0, %c0_0, %c0_1] : memref<1x34x128xf32, #tpu.memory_space<vmem>>, vector<1x34x128xf32>
    %1 = vector.shape_cast %0 : vector<1x34x128xf32> to vector<34x128xf32>
    %c0_2 = arith.constant 0 : index
    %c0_3 = arith.constant 0 : index
    %2 = vector.load %arg3[%c0_2, %c0_3] : memref<34x128xf32, #tpu.memory_space<vmem>>, vector<34x128xf32>
    %c0_4 = arith.constant 0 : index
    %c0_5 = arith.constant 0 : index
    %3 = vector.load %arg4[%c0_4, %c0_5] : memref<34x128xf32, #tpu.memory_space<vmem>>, vector<34x128xf32>
    %4 = tpu.iota {dimensions = array<i32: 1>} : vector<34x128xi32>
    %c2_i32 = arith.constant 2 : i32
    %c0_i32 = arith.constant 0 : i32
    %5 = arith.cmpi eq, %c2_i32, %c0_i32 : i32
    %c1_i32 = arith.constant 1 : i32
    %6 = arith.select %5, %c1_i32, %c2_i32 : i32
    %7 = vector.broadcast %6 : i32 to vector<34x128xi32>
    %8 = arith.remsi %4, %7 : vector<34x128xi32>
    %c0_i32_6 = arith.constant 0 : i32
    %9 = vector.broadcast %c0_i32_6 : i32 to vector<34x128xi32>
    %10 = arith.cmpi ne, %8, %9 : vector<34x128xi32>
    %c0_i32_7 = arith.constant 0 : i32
    %11 = vector.broadcast %c0_i32_7 : i32 to vector<34x128xi32>
    %12 = arith.cmpi slt, %8, %11 : vector<34x128xi32>
    %c0_i32_8 = arith.constant 0 : i32
    %13 = arith.cmpi slt, %6, %c0_i32_8 : i32
    %14 = vector.broadcast %13 : i1 to vector<34x128xi1>
    %15 = vector.broadcast %14 : vector<34x128xi1> to vector<34x128xi1>
    %16 = arith.xori %12, %15 : vector<34x128xi1>
    %17 = arith.andi %16, %10 : vector<34x128xi1>
    %18 = vector.broadcast %6 : i32 to vector<34x128xi32>
    %19 = arith.addi %8, %18 : vector<34x128xi32>
    %20 = arith.select %17, %19, %8 : vector<34x128xi1>, vector<34x128xi32>
    %c0_i32_9 = arith.constant 0 : i32
    %21 = vector.broadcast %c0_i32_9 : i32 to vector<34x128xi32>
    %22 = arith.cmpi eq, %20, %21 : vector<34x128xi32>
    %c1_i32_10 = arith.constant 1 : i32
    %23 = vector.broadcast %c1_i32_10 : i32 to vector<34x128xi32>
    %24 = arith.addi %4, %23 : vector<34x128xi32>
    %c1_i32_11 = arith.constant 1 : i32
    %25 = vector.broadcast %c1_i32_11 : i32 to vector<34x128xi32>
    %26 = arith.subi %4, %25 : vector<34x128xi32>
    %27 = arith.select %22, %24, %26 : vector<34x128xi1>, vector<34x128xi32>
    %c1_i32_12 = arith.constant 1 : i32
    %28 = tpu.dynamic_rotate %4 by %c1_i32_12 dim 1 : vector<34x128xi32>, i32 -> vector<34x128xi32>
    %c1_i32_13 = arith.constant 1 : i32
    %29 = tpu.dynamic_rotate %1 by %c1_i32_13 dim 1 : vector<34x128xf32>, i32 -> vector<34x128xf32>
    %c127_i32 = arith.constant 127 : i32
    %30 = tpu.dynamic_rotate %1 by %c127_i32 dim 1 : vector<34x128xf32>, i32 -> vector<34x128xf32>
    %31 = arith.cmpi eq, %28, %27 : vector<34x128xi32>
    %32 = arith.select %31, %29, %30 : vector<34x128xi1>, vector<34x128xf32>
    %33 = arith.mulf %1, %2 : vector<34x128xf32>
    %34 = arith.mulf %32, %3 : vector<34x128xf32>
    %35 = arith.addf %33, %34 : vector<34x128xf32>
    %c0_14 = arith.constant 0 : index
    %c0_15 = arith.constant 0 : index
    %c0_16 = arith.constant 0 : index
    %36 = vector.load %arg5[%c0_14, %c0_15, %c0_16] : memref<1x34x128xf32, #tpu.memory_space<vmem>>, vector<1x34x128xf32>
    %37 = vector.shape_cast %36 : vector<1x34x128xf32> to vector<34x128xf32>
    %38 = vector.shape_cast %35 : vector<34x128xf32> to vector<1x34x128xf32>
    tpu.vector_store %arg5[%c0_14, %c0_15, %c0_16], %38 {strides = array<i32>} : memref<1x34x128xf32, #tpu.memory_space<vmem>>, vector<1x34x128xf32>,
    return
  }
  func.func @transform_0(%arg0: i32, %arg1: i32) -> (i32, i32, i32) {
    %c0_i32 = arith.constant 0 : i32
    %c0_i32_0 = arith.constant 0 : i32
    return %arg1, %arg0, %c0_i32 : i32, i32, i32
  }
  func.func @transform_1(%arg0: i32, %arg1: i32) -> (i32, i32) {
    %c0_i32 = arith.constant 0 : i32
    %c0_i32_0 = arith.constant 0 : i32
    return %arg0, %c0_i32 : i32, i32
  }
  func.func @transform_2(%arg0: i32, %arg1: i32) -> (i32, i32) {
    %c0_i32 = arith.constant 0 : i32
    %c0_i32_0 = arith.constant 0 : i32
    return %arg0, %c0_i32 : i32, i32
  }
  func.func @transform_3(%arg0: i32, %arg1: i32) -> (i32, i32, i32) {
    %c0_i32 = arith.constant 0 : i32
    %c0_i32_0 = arith.constant 0 : i32
    return %arg1, %arg0, %c0_i32 : i32, i32, i32
  }
}

</mosaic_0001>

<bundles_post_ra>
// kernel: vision_rope_forward.1
= control target key start
LH: loop header
LB: loop body
LE: loop exit
PB: predicated region body
PF: predicated region fallthrough
CT: control target
= control target key end

     0   :  { %s537_s12 = smov 0   ;;  %s539_s13 = smov 0   ;;  %s628_s0 = inlined_call_operand.vmem [shape: f32[2,34,128], index: 0, kind: input, shape index: {}]   ;;  %s629_s1 = inlined_call_operand.vmem [shape: f32[34,128], index: 1, kind: input, shape index: {}]   ;;  %s630_s2 = inlined_call_operand.vmem [shape: f32[34,128], index: 2, kind: input, shape index: {}]   ;;  %s631_s3 = inlined_call_operand.vmem [shape: f32[2,34,128], index: 3, kind: output, shape index: {}]  }
   0x1   :  { %s541_s14 = smov 0  }
   0x2 LB: > { %s22_s15 = sadd.s32 1, %s509_s13  ;;  %p458_p0 = scmp.ge.s32.totalorder %s513_s14, 1  ;;  %s513_s14 = sphi %s541_s14, %s13_s14   ;;  %s509_s13 = sphi %s539_s13, %s635_s13   ;;  %s505_s12 = sphi %s537_s12, %s634_s12  }
   0x3   : > { %p23_p1 = scmp.ge.s32.totalorder %s22_s15, 2  ;;  %p180_p2 = scmp.lt.s32.totalorder %s513_s14, 3 }
   0x5   : > { %s637_s15 = smov (%p23_p1, %s22_s15), 0  ;;  %p181_p3 = pnand %p458_p0, %p180_p2 }
   0x6   : > { %p223_p4 = scmp.lt.s32.totalorder (!%p181_p3), %s505_s12, 1  ;;  %s515_s16 = smov (!%p181_p3), 1  }
   0x7   : > { %184 = sbr.rel (%p181_p3) target bundleno = 157 (0x9d), region = 32  ;;  %s516_s21 = smov (!%p181_p3), 127  }
   0xc   : > { %v269_v0 = vlaneseq  ;;  %s639_s12 = smov (!%p223_p4, %s505_s12), 1  ;;  %v259_v15 = vld [vmem:[%s629_s1] sm:$0xff]  ;;  %v260_v22 = vld [vmem:[%s629_s1 + $0x8] sm:$0xff]  ;;  %v261_v23 = vld [vmem:[%s629_s1 + $0x10] sm:$0xff] }
   0xd   : > { %s464_s17 = smul.u32 40, %s639_s12  ;;  %v264_v17 = vld [vmem:[%s630_s2] sm:$0xff]  ;;  %v265_v26 = vld [vmem:[%s630_s2 + $0x8] sm:$0xff]  ;;  %v266_v27 = vld [vmem:[%s630_s2 + $0x10] sm:$0xff] }
   0xe   : > { %v270_v1 = vand.u32 127, %v269_v0  ;;  %v262_v33 = vld [vmem:[%s629_s1 + $0x18] sm:$0xff]  ;;  %v263_v34 = vld [vmem:[%s629_s1 + $0x20] sm:$0x3] }
   0xf   : > { %s230_s20 = scalar_lea.vmem %s628_s0, %s464_s17  ;;  %s586_s5 = scalar_lea.vmem %s631_s3, %s464_s17  ;;  %v267_v39 = vld [vmem:[%s630_s2 + $0x18] sm:$0xff]  ;;  %v268_v40 = vld [vmem:[%s630_s2 + $0x20] sm:$0x3] }
  0x10   : > { %287 = vrot.lane.b32.xlu0 %v270_v1, %s515_s16  ;;  %v255_v2 = vld [vmem:[%s230_s20 + $0x8] sm:$0xff]  ;;  %v254_v3 = vld [vmem:[%s230_s20] sm:$0xff]  ;;  %v256_v4 = vld [vmem:[%s230_s20 + $0x10] sm:$0xff]  ;;  %v275_v8 = vand.u32 1, %v270_v1  ;;  %v284_v11 = vadd.s32 1, %v270_v1  ;;  %v461_v12 = vadd.s32 4294967295, %v270_v1 }
  0x11   : > { %291 = vrot.lane.b32.xlu1 %v255_v2, %s515_s16  ;;  %v257_v5 = vld [vmem:[%s230_s20 + $0x18] sm:$0xff]  ;;  %v258_v6 = vld [vmem:[%s230_s20 + $0x20] sm:$0x3]  ;;  %v315_v18 = vmul.f32 %v259_v15, %v254_v3  ;;  %v316_v28 = vmul.f32 %v260_v22, %v255_v2  ;;  %v317_v29 = vmul.f32 %v261_v23, %v256_v4 }
  0x12   : > { %vm283_vm0 = vcmp.eq.s32.totalorder %v275_v8, 0  ;;  %v318_v41 = vmul.f32 %v262_v33, %v257_v5  ;;  %v319_v42 = vmul.f32 %v263_v34, %v258_v6 }
  0x13   : > { %v286_v16 = vsel %vm283_vm0, %v284_v11, %v461_v12 }
  0x14   : > { %289 = vrot.lane.b32.xlu0 %v254_v3, %s515_s16 }
  0x15   : > { %293 = vrot.lane.b32.xlu1 %v256_v4, %s515_s16 }
  0x18   : > { %295 = vrot.lane.b32.xlu0 %v257_v5, %s515_s16 }
  0x19   : > { %297 = vrot.lane.b32.xlu1 %v258_v6, %s515_s16 }
  0x1c   : > { %299 = vrot.lane.b32.xlu0 %v254_v3, %s516_s21 }
  0x1d   : > { %301 = vrot.lane.b32.xlu1 %v255_v2, %s516_s21 }
  0x20   : > { %303 = vrot.lane.b32.xlu0 %v256_v4, %s516_s21 }
  0x21   : > { %305 = vrot.lane.b32.xlu1 %v257_v5, %s516_s21 }
  0x24   : > { %307 = vrot.lane.b32.xlu0 %v258_v6, %s516_s21 }
  0x82   : > { %v288_v7 = vpop.permute.xlu0 %287 }
  0x83   : > { %v292_v9 = vpop.permute.xlu1 %291  ;;  %vm569_vm1 = vcmp.eq.s32.totalorder %v288_v7, %v286_v16 }
  0x86   : > { %v290_v10 = vpop.permute.xlu0 %289 }
  0x87   : > { %v294_v13 = vpop.permute.xlu1 %293 }
  0x8a   : > { %v296_v14 = vpop.permute.xlu0 %295 }
  0x8b   : > { %v298_v20 = vpop.permute.xlu1 %297 }
  0x8e   : > { %v300_v21 = vpop.permute.xlu0 %299 }
  0x8f   : > { %v310_v24 = vsel %vm569_vm1, %v290_v10, %v300_v21  ;;  %v302_v31 = vpop.permute.xlu1 %301 }
  0x90   : > { %v320_v25 = vmul.f32 %v310_v24, %v264_v17  ;;  %v311_v35 = vsel %vm569_vm1, %v292_v9, %v302_v31 }
  0x91   : > { %v321_v37 = vmul.f32 %v311_v35, %v265_v26 }
  0x92   : > { %v325_v30 = vadd.f32 %v320_v25, %v315_v18  ;;  %v304_v32 = vpop.permute.xlu0 %303 }
  0x93   : > { %v312_v36 = vsel %vm569_vm1, %v294_v13, %v304_v32  ;;  %v326_v43 = vadd.f32 %v321_v37, %v316_v28  ;;  %v306_v45 = vpop.permute.xlu1 %305 }
  0x94   : > { %330 = vst [vmem:[%s586_s5] sm:$0xff] %v325_v30  ;;  %v322_v38 = vmul.f32 %v312_v36, %v266_v27  ;;  %v313_v47 = vsel %vm569_vm1, %v296_v14, %v306_v45 }
  0x95   : > { %331 = vst [vmem:[%s586_s5 + $0x8] sm:$0xff] %v326_v43  ;;  %v323_v49 = vmul.f32 %v313_v47, %v267_v39 }
  0x96   : > { %v327_v44 = vadd.f32 %v322_v38, %v317_v29  ;;  %v308_v46 = vpop.permute.xlu0 %307 }
  0x97   : > { %v314_v48 = vsel %vm569_vm1, %v298_v20, %v308_v46  ;;  %v328_v51 = vadd.f32 %v323_v49, %v318_v41 }
  0x98   : > { %332 = vst [vmem:[%s586_s5 + $0x10] sm:$0xff] %v327_v44  ;;  %v324_v50 = vmul.f32 %v314_v48, %v268_v40 }
  0x99   : > { %333 = vst [vmem:[%s586_s5 + $0x18] sm:$0xff] %v328_v51 }
  0x9a   : > { %v329_v52 = vadd.f32 %v324_v50, %v319_v42 }
  0x9c   : > { %334 = vst [vmem:[%s586_s5 + $0x20] sm:$0x3] %v329_v52 }
  0x9d PF: > { %s13_s14 = sadd.s32 1, %s513_s14   ;;  %s634_s12 = smov %s509_s13 }
  0x9e   : > { %p10_p5 = scmp.ge.s32.totalorder %s13_s14, 4   ;;  %s635_s13 = smov %s637_s15 }
  0xa0   :  { %12 = sbr.rel (!%p10_p5) target bundleno = 2 (0x2), region = 68 }

</bundles_post_ra>
